<compile_context>
chip_gen: v7x
topology: tpu7x:2x2x1
jax: 0.10.0
libtpu: 0.0.40
codegen_flags: <defaults>
</compile_context>

<pallas_src>
import functools

import jax
import jax.numpy as jnp
import numpy as np
from jax import lax
from jax.experimental import pallas as pl
from jax.experimental.pallas import tpu as pltpu


# ---------------------------------------------------------------------------
# Kernel 1: QKV linear, tiled over rows (M axis, "parallel" for megacore).
# Q / K / V are written to separate outputs so no XLA channel-slice copies of
# the fused qkv tensor are ever materialized in HBM, and every downstream
# array is lane-dense in its own last dim.
# ---------------------------------------------------------------------------
def _qkv_kernel(x_ref, wq_ref, wk_ref, wv_ref, bq_ref, bk_ref, bv_ref,
                q_ref, k_ref, v_ref):
    x = x_ref[...]
    q_ref[...] = (jnp.dot(x, wq_ref[...], preferred_element_type=jnp.float32)
                  + bq_ref[...])
    k_ref[...] = (jnp.dot(x, wk_ref[...], preferred_element_type=jnp.float32)
                  + bk_ref[...])
    v_ref[...] = (jnp.dot(x, wv_ref[...], preferred_element_type=jnp.float32)
                  + bv_ref[...])


def qkv_linear(x_flat, w_q, w_k, w_v, b_q, b_k, b_v, *, tm=512):
    N, dim = x_flat.shape
    qk_dim = w_q.shape[1]
    v_dim = w_v.shape[1]
    tm = min(tm, N)
    const = lambda i: (0, 0)   # weights / bias stay resident
    rows = lambda i: (i, 0)    # row tiles march down M
    return pl.pallas_call(
        _qkv_kernel,
        out_shape=(
            jax.ShapeDtypeStruct((N, qk_dim), jnp.float32),
            jax.ShapeDtypeStruct((N, qk_dim), jnp.float32),
            jax.ShapeDtypeStruct((N, v_dim), jnp.float32),
        ),
        grid=(pl.cdiv(N, tm),),
        in_specs=[
            pl.BlockSpec((tm, dim), rows),
            pl.BlockSpec((dim, qk_dim), const),
            pl.BlockSpec((dim, qk_dim), const),
            pl.BlockSpec((dim, v_dim), const),
            pl.BlockSpec((1, qk_dim), const),
            pl.BlockSpec((1, qk_dim), const),
            pl.BlockSpec((1, v_dim), const),
        ],
        out_specs=(
            pl.BlockSpec((tm, qk_dim), rows),
            pl.BlockSpec((tm, qk_dim), rows),
            pl.BlockSpec((tm, v_dim), rows),
        ),
        compiler_params=pltpu.CompilerParams(
            dimension_semantics=("parallel",)),
        # TODO(synk): optionally emit Q/K/V in bfloat16 (f32 accumulate, cast on
        # store) to halve HBM traffic if downstream tolerates it.
    )(x_flat, w_q, w_k, w_v, b_q, b_k, b_v)


# ---------------------------------------------------------------------------
# Kernel 2: routing logits.
#   q, k: (b, n_hw, s_hw, qk_dim)  ->  logits: (b, n_hw, n_hw)
# Mean normalization (1/s_hw on both operands) and qk scale are folded into a
# single scalar applied to q; the similarity uses dot_general contracting the
# last dims of both operands (no explicit transpose / XLU relayout).
# ---------------------------------------------------------------------------
def _router_kernel(q_ref, k_ref, logits_ref, *, fused_scale):
    q_sum = jnp.sum(q_ref[0], axis=1)   # (n_hw, qk_dim)
    k_sum = jnp.sum(k_ref[0], axis=1)   # (n_hw, qk_dim)
    logits_ref[0] = lax.dot_general(
        q_sum * fused_scale, k_sum,
        dimension_numbers=(((1,), (1,)), ((), ())),
        preferred_element_type=jnp.float32,
    )


def router_logits(q_pix, k_pix, fused_scale):
    b, n_hw, s_hw, qk_dim = q_pix.shape
    kernel = functools.partial(_router_kernel, fused_scale=fused_scale)
    return pl.pallas_call(
        kernel,
        out_shape=jax.ShapeDtypeStruct((b, n_hw, n_hw), jnp.float32),
        grid=(b,),
        in_specs=[
            pl.BlockSpec((1, n_hw, s_hw, qk_dim), lambda i: (i, 0, 0, 0)),
            pl.BlockSpec((1, n_hw, s_hw, qk_dim), lambda i: (i, 0, 0, 0)),
        ],
        out_specs=pl.BlockSpec((1, n_hw, n_hw), lambda i: (i, 0, 0)),
        compiler_params=pltpu.CompilerParams(dimension_semantics=("parallel",)),
    )(q_pix, k_pix)


# ---------------------------------------------------------------------------
# Kernel 3: V gather (data-dependent window selection).
#   v_rows: (b, n_hw, s_hw*dim) lane-dense V windows, kept in HBM (pl.ANY)
#   r_idx : flat (b*n_hw*topk,) int32 in SMEM via scalar prefetch
#   out   : (b, n_hw, topk, s_hw*dim),  out[b, p, k] = v_rows[b, r_idx[b, p, k]]
# grid=(b, n_hw): each step issues all `topk` async copies (overlapped), so the
# per-step fixed overhead is amortized and only the needed V bytes are read.
# ---------------------------------------------------------------------------
def _gather_v_kernel(idx_ref, v_hbm_ref, o_ref, sem, *, n_hw, topk):
    bi = pl.program_id(0)
    pi = pl.program_id(1)
    base = (bi * n_hw + pi) * topk
    copies = []
    for k in range(topk):                       # static unroll, all DMAs in flight
        src_row = idx_ref[base + k]
        cp = pltpu.make_async_copy(
            v_hbm_ref.at[bi, src_row],          # (s_hw*dim,) contiguous in HBM
            o_ref.at[0, 0, k],                  # (s_hw*dim,) row of the output block
            sem.at[k],
        )
        cp.start()
        copies.append(cp)
    for cp in copies:
        cp.wait()


def gather_v(r_idx_flat, v_rows, *, n_hw, topk):
    b = v_rows.shape[0]
    row = v_rows.shape[-1]                      # s_hw * dim (lane-dense)
    kernel = functools.partial(_gather_v_kernel, n_hw=n_hw, topk=topk)
    grid_spec = pltpu.PrefetchScalarGridSpec(
        num_scalar_prefetch=1,
        grid=(b, n_hw),
        in_specs=[pl.BlockSpec(memory_space=pl.ANY)],
        out_specs=pl.BlockSpec((1, 1, topk, row),
                               lambda bi, pi, idx: (bi, pi, 0, 0)),
        scratch_shapes=[pltpu.SemaphoreType.DMA((topk,))],
    )
    return pl.pallas_call(
        kernel,
        out_shape=jax.ShapeDtypeStruct((b, n_hw, topk, row), jnp.float32),
        grid_spec=grid_spec,
        compiler_params=pltpu.CompilerParams(
            dimension_semantics=("parallel", "parallel")),
    )(r_idx_flat, v_rows)


# ---------------------------------------------------------------------------
# Full BA.forward (Pallas-backed)
# ---------------------------------------------------------------------------
def ba_forward(x, w_qkv, b_qkv, *, win_s, topk, qkv_tile=512):
    b, c, h, w = x.shape
    dim = c
    qk_dim = dim
    n_w, n_h = h // win_s, w // win_s
    hs, ws = h // n_h, w // n_w
    n_hw = n_h * n_w
    s_hw = hs * ws
    scale = qk_dim ** (-0.5)

    # NCHW -> (b*n_hw*s_hw, c) windowed rows (cheap layout glue)
    x_nhwc = jnp.transpose(x, (0, 2, 3, 1))
    x_win = (
        x_nhwc.reshape(b, n_h, hs, n_w, ws, c)
        .transpose(0, 1, 3, 2, 4, 5)
        .reshape(b * n_hw * s_hw, c)
    )

    # Split qkv weights/bias once (tiny) so the matmul kernel emits Q/K/V directly.
    w_q = w_qkv[:, :qk_dim]
    w_k = w_qkv[:, qk_dim:2 * qk_dim]
    w_v = w_qkv[:, 2 * qk_dim:]
    b_q = b_qkv[:qk_dim].reshape(1, qk_dim)
    b_k = b_qkv[qk_dim:2 * qk_dim].reshape(1, qk_dim)
    b_v = b_qkv[2 * qk_dim:].reshape(1, dim)

    q_flat, k_flat, v_flat = qkv_linear(
        x_win, w_q, w_k, w_v, b_q, b_k, b_v, tm=qkv_tile)

    q_pix = q_flat.reshape(b, n_hw, s_hw, qk_dim)     # free reshapes (contiguous)
    k_pix = k_flat.reshape(b, n_hw, s_hw, qk_dim)
    v_rows = v_flat.reshape(b, n_hw, s_hw * dim)      # lane-dense rows for the gather

    # TopkRouting: fused mean+scale similarity (Pallas), top-k in plain JAX (tiny).
    logits = router_logits(q_pix, k_pix, scale / float(s_hw * s_hw))
    topk_logits, r_idx = jax.lax.top_k(logits, topk)  # (b, n_hw, topk)
    # mul_weight='none' in the module -> softmax weights are computed but unused.
    _ = jax.nn.softmax(topk_logits, axis=-1)

    # KVGather (Pallas scalar-prefetch + manual DMA), V half only.
    v_sel = gather_v(r_idx.astype(jnp.int32).reshape(-1), v_rows,
                     n_hw=n_hw, topk=topk)            # (b, n_hw, topk, s_hw*dim)
    return v_sel.reshape(b, n_hw, topk, s_hw, dim)


# ---------------------------------------------------------------------------
# Pure-JAX reference for validation
# ---------------------------------------------------------------------------
def ba_reference(x, w_qkv, b_qkv, *, win_s, topk):
    b, c, h, w = x.shape
    dim = c
    qk_dim = dim
    n_w, n_h = h // win_s, w // win_s
    hs, ws = h // n_h, w // n_w
    scale = qk_dim ** (-0.5)

    x_nhwc = jnp.transpose(x, (0, 2, 3, 1))
    x_win = (
        x_nhwc.reshape(b, n_h, hs, n_w, ws, c)
        .transpose(0, 1, 3, 2, 4, 5)
        .reshape(b, n_h * n_w, hs, ws, c)
    )
    qkv = x_win @ w_qkv + b_qkv
    q = qkv[..., :qk_dim]
    kv = qkv[..., qk_dim:]
    q_win = q.mean(axis=(2, 3))
    k_win = kv[..., :qk_dim].mean(axis=(2, 3))
    logits = (q_win * scale) @ jnp.swapaxes(k_win, -1, -2)
    _, r_idx = jax.lax.top_k(logits, topk)
    kv_pix = kv.reshape(b, n_h * n_w, hs * ws, 2 * dim)
    gathered = jax.vmap(lambda kv_b, idx_b: kv_b[idx_b])(kv_pix, r_idx)
    return gathered[..., qk_dim:]


if __name__ == "__main__":
    # Small, module-consistent shapes.
    b, dim, h, w = 2, 8, 16, 16
    win_s, n_win, topk, num_heads = 4, 4, 4, 2  # n_win, num_heads unused in this forward

    key = jax.random.PRNGKey(0)
    kx, kw, kb = jax.random.split(key, 3)
    x = jax.random.normal(kx, (b, dim, h, w), dtype=jnp.float32)
    w_qkv = jax.random.normal(kw, (dim, 3 * dim), dtype=jnp.float32) * 0.1
    b_qkv = jax.random.normal(kb, (3 * dim,), dtype=jnp.float32) * 0.1

    # qkv_tile=128 exercises the multi-block pipelined matmul path at this size.
    out = ba_forward(x, w_qkv, b_qkv, win_s=win_s, topk=topk, qkv_tile=128)
    out = jax.block_until_ready(out)

    ref = ba_reference(x, w_qkv, b_qkv, win_s=win_s, topk=topk)
    np.testing.assert_allclose(np.asarray(out), np.asarray(ref), rtol=1e-4, atol=1e-4)

    print("KERNEL_OK")
</pallas_src>

<mosaic_0001>
module attributes {stable_mosaic.version = 11 : i64} {
  func.func @_qkv_kernel(%arg0: i32, %arg1: memref<128x8xf32, #tpu.memory_space<vmem>>, %arg2: memref<8x8xf32, #tpu.memory_space<vmem>>, %arg3: memref<8x8xf32, #tpu.memory_space<vmem>>, %arg4: memref<8x8xf32, #tpu.memory_space<vmem>>, %arg5: memref<1x8xf32, #tpu.memory_space<vmem>>, %arg6: memref<1x8xf32, #tpu.memory_space<vmem>>, %arg7: memref<1x8xf32, #tpu.memory_space<vmem>>, %arg8: memref<128x8xf32, #tpu.memory_space<vmem>>, %arg9: memref<128x8xf32, #tpu.memory_space<vmem>>, %arg10: memref<128x8xf32, #tpu.memory_space<vmem>>) attributes {dimension_semantics = [#tpu.dimension_semantics<parallel>], iteration_bounds = array<i64: 4>, scalar_prefetch = 0 : i64, scratch_operands = 0 : i64, tpu.core_type = #tpu.core_type<tc>, window_params = [{transform_indices = @transform_0, window_bounds = array<i64: 128, 8>}, {pipeline_mode = #tpu.pipeline_mode<synchronous>, transform_indices = @transform_1, window_bounds = array<i64: 8, 8>}, {pipeline_mode = #tpu.pipeline_mode<synchronous>, transform_indices = @transform_2, window_bounds = array<i64: 8, 8>}, {pipeline_mode = #tpu.pipeline_mode<synchronous>, transform_indices = @transform_3, window_bounds = array<i64: 8, 8>}, {pipeline_mode = #tpu.pipeline_mode<synchronous>, transform_indices = @transform_4, window_bounds = array<i64: 1, 8>}, {pipeline_mode = #tpu.pipeline_mode<synchronous>, transform_indices = @transform_5, window_bounds = array<i64: 1, 8>}, {pipeline_mode = #tpu.pipeline_mode<synchronous>, transform_indices = @transform_6, window_bounds = array<i64: 1, 8>}, {transform_indices = @transform_7, window_bounds = array<i64: 128, 8>}, {transform_indices = @transform_8, window_bounds = array<i64: 128, 8>}, {transform_indices = @transform_9, window_bounds = array<i64: 128, 8>}]} {
    %c0 = arith.constant 0 : index
    %c0_0 = arith.constant 0 : index
    %0 = vector.load %arg1[%c0, %c0_0] : memref<128x8xf32, #tpu.memory_space<vmem>>, vector<128x8xf32>
    %c0_1 = arith.constant 0 : index
    %c0_2 = arith.constant 0 : index
    %1 = vector.load %arg2[%c0_1, %c0_2] : memref<8x8xf32, #tpu.memory_space<vmem>>, vector<8x8xf32>
    %cst = arith.constant dense<0.000000e+00> : vector<128x8xf32>
    %2 = tpu.matmul %0, %1, %cst {dimension_numbers = #tpu.dot_dimension_numbers<[1], [0], [0], [1], [0, 0, 1, 1], [], []>} : vector<128x8xf32>, vector<8x8xf32>, vector<128x8xf32> -> vector<128x8xf32>
    %c0_3 = arith.constant 0 : index
    %c0_4 = arith.constant 0 : index
    %3 = vector.load %arg5[%c0_3, %c0_4] : memref<1x8xf32, #tpu.memory_space<vmem>>, vector<1x8xf32>
    %4 = vector.broadcast %3 : vector<1x8xf32> to vector<128x8xf32>
    %5 = arith.addf %2, %4 : vector<128x8xf32>
    %c0_5 = arith.constant 0 : index
    %c0_6 = arith.constant 0 : index
    %6 = vector.load %arg8[%c0_5, %c0_6] : memref<128x8xf32, #tpu.memory_space<vmem>>, vector<128x8xf32>
    tpu.vector_store %arg8[%c0_5, %c0_6], %5 {strides = array<i32>} : memref<128x8xf32, #tpu.memory_space<vmem>>, vector<128x8xf32>,
    %c0_7 = arith.constant 0 : index
    %c0_8 = arith.constant 0 : index
    %7 = vector.load %arg3[%c0_7, %c0_8] : memref<8x8xf32, #tpu.memory_space<vmem>>, vector<8x8xf32>
    %cst_9 = arith.constant dense<0.000000e+00> : vector<128x8xf32>
    %8 = tpu.matmul %0, %7, %cst_9 {dimension_numbers = #tpu.dot_dimension_numbers<[1], [0], [0], [1], [0, 0, 1, 1], [], []>} : vector<128x8xf32>, vector<8x8xf32>, vector<128x8xf32> -> vector<128x8xf32>
    %c0_10 = arith.constant 0 : index
    %c0_11 = arith.constant 0 : index
    %9 = vector.load %arg6[%c0_10, %c0_11] : memref<1x8xf32, #tpu.memory_space<vmem>>, vector<1x8xf32>
    %10 = vector.broadcast %9 : vector<1x8xf32> to vector<128x8xf32>
    %11 = arith.addf %8, %10 : vector<128x8xf32>
    %c0_12 = arith.constant 0 : index
    %c0_13 = arith.constant 0 : index
    %12 = vector.load %arg9[%c0_12, %c0_13] : memref<128x8xf32, #tpu.memory_space<vmem>>, vector<128x8xf32>
    tpu.vector_store %arg9[%c0_12, %c0_13], %11 {strides = array<i32>} : memref<128x8xf32, #tpu.memory_space<vmem>>, vector<128x8xf32>,
    %c0_14 = arith.constant 0 : index
    %c0_15 = arith.constant 0 : index
    %13 = vector.load %arg4[%c0_14, %c0_15] : memref<8x8xf32, #tpu.memory_space<vmem>>, vector<8x8xf32>
    %cst_16 = arith.constant dense<0.000000e+00> : vector<128x8xf32>
    %14 = tpu.matmul %0, %13, %cst_16 {dimension_numbers = #tpu.dot_dimension_numbers<[1], [0], [0], [1], [0, 0, 1, 1], [], []>} : vector<128x8xf32>, vector<8x8xf32>, vector<128x8xf32> -> vector<128x8xf32>
    %c0_17 = arith.constant 0 : index
    %c0_18 = arith.constant 0 : index
    %15 = vector.load %arg7[%c0_17, %c0_18] : memref<1x8xf32, #tpu.memory_space<vmem>>, vector<1x8xf32>
    %16 = vector.broadcast %15 : vector<1x8xf32> to vector<128x8xf32>
    %17 = arith.addf %14, %16 : vector<128x8xf32>
    %c0_19 = arith.constant 0 : index
    %c0_20 = arith.constant 0 : index
    %18 = vector.load %arg10[%c0_19, %c0_20] : memref<128x8xf32, #tpu.memory_space<vmem>>, vector<128x8xf32>
    tpu.vector_store %arg10[%c0_19, %c0_20], %17 {strides = array<i32>} : memref<128x8xf32, #tpu.memory_space<vmem>>, vector<128x8xf32>,
    return
  }
  func.func @transform_0(%arg0: i32) -> (i32, i32) {
    %c0_i32 = arith.constant 0 : i32
    %c0_i32_0 = arith.constant 0 : i32
    return %arg0, %c0_i32 : i32, i32
  }
  func.func @transform_1(%arg0: i32) -> (i32, i32) {
    %c0_i32 = arith.constant 0 : i32
    %c0_i32_0 = arith.constant 0 : i32
    %c0_i32_1 = arith.constant 0 : i32
    return %c0_i32, %c0_i32_0 : i32, i32
  }
  func.func @transform_2(%arg0: i32) -> (i32, i32) {
    %c0_i32 = arith.constant 0 : i32
    %c0_i32_0 = arith.constant 0 : i32
    %c0_i32_1 = arith.constant 0 : i32
    return %c0_i32, %c0_i32_0 : i32, i32
  }
  func.func @transform_3(%arg0: i32) -> (i32, i32) {
    %c0_i32 = arith.constant 0 : i32
    %c0_i32_0 = arith.constant 0 : i32
    %c0_i32_1 = arith.constant 0 : i32
    return %c0_i32, %c0_i32_0 : i32, i32
  }
  func.func @transform_4(%arg0: i32) -> (i32, i32) {
    %c0_i32 = arith.constant 0 : i32
    %c0_i32_0 = arith.constant 0 : i32
    %c0_i32_1 = arith.constant 0 : i32
    return %c0_i32, %c0_i32_0 : i32, i32
  }
  func.func @transform_5(%arg0: i32) -> (i32, i32) {
    %c0_i32 = arith.constant 0 : i32
    %c0_i32_0 = arith.constant 0 : i32
    %c0_i32_1 = arith.constant 0 : i32
    return %c0_i32, %c0_i32_0 : i32, i32
  }
  func.func @transform_6(%arg0: i32) -> (i32, i32) {
    %c0_i32 = arith.constant 0 : i32
    %c0_i32_0 = arith.constant 0 : i32
    %c0_i32_1 = arith.constant 0 : i32
    return %c0_i32, %c0_i32_0 : i32, i32
  }
  func.func @transform_7(%arg0: i32) -> (i32, i32) {
    %c0_i32 = arith.constant 0 : i32
    %c0_i32_0 = arith.constant 0 : i32
    return %arg0, %c0_i32 : i32, i32
  }
  func.func @transform_8(%arg0: i32) -> (i32, i32) {
    %c0_i32 = arith.constant 0 : i32
    %c0_i32_0 = arith.constant 0 : i32
    return %arg0, %c0_i32 : i32, i32
  }
  func.func @transform_9(%arg0: i32) -> (i32, i32) {
    %c0_i32 = arith.constant 0 : i32
    %c0_i32_0 = arith.constant 0 : i32
    return %arg0, %c0_i32 : i32, i32
  }
}

</mosaic_0001>

<bundles_post_ra>
// kernel: tpu_custom_call.1
= control target key start
LH: loop header
LB: loop body
LE: loop exit
PB: predicated region body
PF: predicated region fallthrough
CT: control target
= control target key end

     0   :  { %s1322_s30 = smov 0   ;;  %s1573_s0 = inlined_call_operand.vmem [shape: f32[512,8], index: 0, kind: input, shape index: {}]   ;;  %s1574_s1 = inlined_call_operand.vmem [shape: f32[8,8], index: 1, kind: input, shape index: {}]   ;;  %s1575_s2 = inlined_call_operand.vmem [shape: f32[8,8], index: 2, kind: input, shape index: {}]   ;;  %s1576_s3 = inlined_call_operand.vmem [shape: f32[8,8], index: 3, kind: input, shape index: {}]   ;;  %s1577_s4 = inlined_call_operand.vmem [shape: f32[1,8], index: 4, kind: input, shape index: {}]   ;;  %s1578_s5 = inlined_call_operand.vmem [shape: f32[1,8], index: 5, kind: input, shape index: {}]   ;;  %s1579_s6 = inlined_call_operand.vmem [shape: f32[1,8], index: 6, kind: input, shape index: {}]   ;;  %s1580_s7 = inlined_call_operand.vmem [shape: f32[512,8], index: 7, kind: output, shape index: {0}]   ;;  %s1581_s8 = inlined_call_operand.vmem [shape: f32[512,8], index: 8, kind: output, shape index: {1}]   ;;  %s1582_s9 = inlined_call_operand.vmem [shape: f32[512,8], index: 9, kind: output, shape index: {2}]  }
   0x1 LB: > { %s1059_s10 = sadd.s32 4294967295, %s1270_s30   ;;  %p1063_p0 = scmp.ge.s32.totalorder %s1270_s30, 1  ;;  %s1270_s30 = sphi %s1322_s30, %s20_s30  }
   0x2   : > { %p293_p1 = scmp.lt.s32.totalorder %s1270_s30, 5 }
   0x4   : > { %p294_p2 = pnand %p1063_p0, %p293_p1 }
   0x5   : > { %v379_v0 = vld [vmem:[%s1574_s1] sm:$0xff] (!%p294_p2)  ;;  %s1064_s13 = sshll.u32 (!%p294_p2), %s1059_s10, 4  ;;  %vm387_vm0 = vcmask (!%p294_p2), 64512  }
   0x6   : > { %297 = sbr.rel (%p294_p2) target bundleno = 279 (0x117), region = 48  ;;  %v597_v1 = vld [vmem:[%s1575_s2] sm:$0xff] (!%p294_p2)  ;;  %1176 = vmatprep.subr.mxu0 (!%p294_p2), %v379_v0  ;;  %1254 = vmatprep.subr.mxu1 (!%p294_p2), %v379_v0  ;;  %p340_p3 = scmp.lt.s32.totalorder (!%p294_p2), %s1064_s13, 63 }
   0x7   : > { %v766_v2 = vld [vmem:[%s1576_s3] sm:$0xff] (!%p294_p2)  ;;  %1177 = vmatpush3.msra.mxu0 (!%p294_p2), %v379_v0  ;;  %1255 = vmatpush3.msra.mxu1 (!%p294_p2), %v379_v0 }
   0x8   : > { %1202 = vmatprep.subr.mxu1 (!%p294_p2), %v597_v1  ;;  %1228 = vmatprep.subr.mxu0 (!%p294_p2), %v766_v2  ;;  %v1072_v19 = vld [vmem:[%s1577_s4] ss:$0 sm:$0xff] (!%p294_p2) }
   0x9   : > { %v1447_v52 = vld [vmem:[%s1578_s5] ss:$0 sm:$0xff] (!%p294_p2) }
   0xa   : > { %v1452_v53 = vld [vmem:[%s1579_s6] ss:$0 sm:$0xff] (!%p294_p2) }
   0xd   : > { %s1584_s13 = smov (!%p340_p3, %s1064_s13), 63 }
   0xe   : > { %s1339_s18 = sshll.u32 %s1584_s13, 3 }
   0xf   : > { %s1345_s21 = scalar_lea.vmem %s1573_s0, %s1339_s18  ;;  %s1418_s26 = scalar_lea.vmem %s1580_s7, %s1339_s18 }
  0x10   : > { %v363_v3 = vld [vmem:[%s1345_s21] sm:$0xff]  ;;  %v364_v5 = vld [vmem:[%s1345_s21 + $0x8] sm:$0xff]  ;;  %v365_v7 = vld [vmem:[%s1345_s21 + $0x10] sm:$0xff]  ;;  %s1466_s13 = scalar_lea.vmem %s1581_s8, %s1339_s18  ;;  %s1472_s16 = scalar_lea.vmem %s1582_s9, %s1339_s18 }
  0x11   : > { %v371_v4 = vld [vmem:[%s1345_s21 + $0x40] sm:$0xff]  ;;  %1178 = vmatprep.mubr.msk.f32.mxu0 %vm387_vm0, %v363_v3  ;;  %v372_v6 = vld [vmem:[%s1345_s21 + $0x48] sm:$0xff]  ;;  %v373_v8 = vld [vmem:[%s1345_s21 + $0x50] sm:$0xff] }
  0x12   : > { %1190 = vmatprep.mubr.msk.f32.mxu1 %vm387_vm0, %v371_v4  ;;  %1179 = vmatmul.mubr.msk.f32.vlgmr.msra.gmra.mrb[0].mxu0 %vm387_vm0, %v364_v5  ;;  %v366_v9 = vld [vmem:[%s1345_s21 + $0x18] sm:$0xff]  ;;  %v367_v11 = vld [vmem:[%s1345_s21 + $0x20] sm:$0xff]  ;;  %v368_v13 = vld [vmem:[%s1345_s21 + $0x28] sm:$0xff] }
  0x13   : > { %1191 = vmatmul.mubr.msk.f32.vlgmr.msra.gmra.mrb[0].mxu1 %vm387_vm0, %v372_v6  ;;  %1229 = vmatpush3.msra.mxu0 %v766_v2  ;;  %v374_v10 = vld [vmem:[%s1345_s21 + $0x58] sm:$0xff]  ;;  %v375_v12 = vld [vmem:[%s1345_s21 + $0x60] sm:$0xff]  ;;  %v376_v14 = vld [vmem:[%s1345_s21 + $0x68] sm:$0xff] }
  0x14   : > { %1203 = vmatpush3.msra.mxu1 %v597_v1  ;;  %1181 = vmatprep.mubr.msk.f32.mxu0 %vm387_vm0, %v365_v7  ;;  %v369_v15 = vld [vmem:[%s1345_s21 + $0x30] sm:$0xff]  ;;  %v370_v17 = vld [vmem:[%s1345_s21 + $0x38] sm:$0xff] }
  0x15   : > { %1193 = vmatprep.mubr.msk.f32.mxu1 %vm387_vm0, %v373_v8  ;;  %v377_v16 = vld [vmem:[%s1345_s21 + $0x70] sm:$0xff]  ;;  %v378_v18 = vld [vmem:[%s1345_s21 + $0x78] sm:$0xff] }
  0x16   : > { %1182 = vmatmul.mubr.msk.f32.gmra.mrb[2].mxu0 %vm387_vm0, %v366_v9 }
  0x17   : > { %1194 = vmatmul.mubr.msk.f32.gmra.mrb[2].mxu1 %vm387_vm0, %v374_v10  ;;  %1184 = vmatprep.mubr.msk.f32.mxu0 %vm387_vm0, %v367_v11 }
  0x18   : > { %1196 = vmatprep.mubr.msk.f32.mxu1 %vm387_vm0, %v375_v12 }
  0x1a   : > { %1185 = vmatmul.mubr.msk.f32.gmra.mrb[4].mxu0 %vm387_vm0, %v368_v13 }
  0x1b   : > { %1197 = vmatmul.mubr.msk.f32.gmra.mrb[4].mxu1 %vm387_vm0, %v376_v14  ;;  %1187 = vmatprep.mubr.msk.f32.mxu0 %vm387_vm0, %v369_v15 }
  0x1c   : > { %1199 = vmatprep.mubr.msk.f32.mxu1 %vm387_vm0, %v377_v16 }
  0x1e   : > { %1188 = vmatmul.mubr.msk.f32.gmra.mrb[6].mxu0 %vm387_vm0, %v370_v17 }
  0x1f   : > { %1200 = vmatmul.mubr.msk.f32.gmra.mrb[6].mxu1 %vm387_vm0, %v378_v18  ;;  %1230 = vmatprep.mubr.msk.f32.mxu0 %vm387_vm0, %v363_v3 }
  0x20   : > { %1204 = vmatprep.mubr.msk.f32.mxu1 %vm387_vm0, %v363_v3 }
  0x22   : > { %1231 = vmatmul.mubr.msk.f32.vlgmr.msra.gmra.mrb[8].mxu0 %vm387_vm0, %v364_v5 }
  0x23   : > { %1205 = vmatmul.mubr.msk.f32.vlgmr.msra.gmra.mrb[8].mxu1 %vm387_vm0, %v364_v5  ;;  %1233 = vmatprep.mubr.msk.f32.mxu0 %vm387_vm0, %v365_v7 }
  0x24   : > { %1207 = vmatprep.mubr.msk.f32.mxu1 %vm387_vm0, %v365_v7 }
  0x26   : > { %1234 = vmatmul.mubr.msk.f32.gmra.mrb[10].mxu0 %vm387_vm0, %v366_v9 }
  0x27   : > { %1208 = vmatmul.mubr.msk.f32.gmra.mrb[10].mxu1 %vm387_vm0, %v366_v9  ;;  %1236 = vmatprep.mubr.msk.f32.mxu0 %vm387_vm0, %v367_v11 }
  0x28   : > { %1210 = vmatprep.mubr.msk.f32.mxu1 %vm387_vm0, %v367_v11 }
  0x2a   : > { %1237 = vmatmul.mubr.msk.f32.gmra.mrb[12].mxu0 %vm387_vm0, %v368_v13 }
  0x2b   : > { %1211 = vmatmul.mubr.msk.f32.gmra.mrb[12].mxu1 %vm387_vm0, %v368_v13  ;;  %1239 = vmatprep.mubr.msk.f32.mxu0 %vm387_vm0, %v369_v15 }
  0x2c   : > { %1213 = vmatprep.mubr.msk.f32.mxu1 %vm387_vm0, %v369_v15 }
  0x2e   : > { %1240 = vmatmul.mubr.msk.f32.gmra.mrb[14].mxu0 %vm387_vm0, %v370_v17 }
  0x2f   : > { %1214 = vmatmul.mubr.msk.f32.gmra.mrb[14].mxu1 %vm387_vm0, %v370_v17  ;;  %1242 = vmatprep.mubr.msk.f32.mxu0 %vm387_vm0, %v371_v4 }
  0x30   : > { %1216 = vmatprep.mubr.msk.f32.mxu1 %vm387_vm0, %v371_v4 }
  0x32   : > { %1243 = vmatmul.mubr.msk.f32.gmra.mrb[16].mxu0 %vm387_vm0, %v372_v6 }
  0x33   : > { %1217 = vmatmul.mubr.msk.f32.gmra.mrb[16].mxu1 %vm387_vm0, %v372_v6  ;;  %1245 = vmatprep.mubr.msk.f32.mxu0 %vm387_vm0, %v373_v8 }
  0x34   : > { %1219 = vmatprep.mubr.msk.f32.mxu1 %vm387_vm0, %v373_v8 }
  0x36   : > { %1246 = vmatmul.mubr.msk.f32.gmra.mrb[18].mxu0 %vm387_vm0, %v374_v10 }
  0x37   : > { %1220 = vmatmul.mubr.msk.f32.gmra.mrb[18].mxu1 %vm387_vm0, %v374_v10  ;;  %1248 = vmatprep.mubr.msk.f32.mxu0 %vm387_vm0, %v375_v12 }
  0x38   : > { %1222 = vmatprep.mubr.msk.f32.mxu1 %vm387_vm0, %v375_v12 }
  0x3a   : > { %1249 = vmatmul.mubr.msk.f32.gmra.mrb[20].mxu0 %vm387_vm0, %v376_v14 }
  0x3b   : > { %1223 = vmatmul.mubr.msk.f32.gmra.mrb[20].mxu1 %vm387_vm0, %v376_v14  ;;  %1251 = vmatprep.mubr.msk.f32.mxu0 %vm387_vm0, %v377_v16 }
  0x3c   : > { %1225 = vmatprep.mubr.msk.f32.mxu1 %vm387_vm0, %v377_v16 }
  0x3e   : > { %1252 = vmatmul.mubr.msk.f32.gmra.mrb[22].mxu0 %vm387_vm0, %v378_v18 }
  0x3f   : > { %1226 = vmatmul.mubr.msk.f32.gmra.mrb[22].mxu1 %vm387_vm0, %v378_v18 }
  0xe5   : > { %v1180_v20 = vpop.f32.mrb[0].mxu0 }
  0xe6   : > { %v1192_v21 = vpop.f32.mrb[0].mxu1  ;;  %v508_v22 = vadd.f32 %v1180_v20, %v1072_v19  ;;  %v502_v24 = vpop.f32.mrb[1].mxu0 }
  0xe7   : > { %v548_v23 = vadd.f32 %v1192_v21, %v1072_v19  ;;  %v542_v25 = vpop.f32.mrb[1].mxu1  ;;  %v503_v26 = vadd.f32 %v1072_v19, %v502_v24 }
  0xe8   : > { %v543_v27 = vadd.f32 %v1072_v19, %v542_v25  ;;  %582 = vst.msk [vmem:[%s1418_s26 + $0x8] sm:$0xff] %vm387_vm0, %v508_v22 }
  0xe9   : > { %590 = vst.msk [vmem:[%s1418_s26 + $0x48] sm:$0xff] %vm387_vm0, %v548_v23  ;;  %581 = vst.msk [vmem:[%s1418_s26] sm:$0xff] %vm387_vm0, %v503_v26  ;;  %v1183_v28 = vpop.f32.mrb[2].mxu0 }
  0xea   : > { %589 = vst.msk [vmem:[%s1418_s26 + $0x40] sm:$0xff] %vm387_vm0, %v543_v27  ;;  %v1195_v29 = vpop.f32.mrb[2].mxu1  ;;  %v518_v30 = vadd.f32 %v1183_v28, %v1072_v19  ;;  %v512_v32 = vpop.f32.mrb[3].mxu0 }
  0xeb   : > { %v558_v31 = vadd.f32 %v1195_v29, %v1072_v19  ;;  %v552_v33 = vpop.f32.mrb[3].mxu1  ;;  %v513_v34 = vadd.f32 %v1072_v19, %v512_v32 }
  0xec   : > { %v553_v35 = vadd.f32 %v1072_v19, %v552_v33  ;;  %584 = vst.msk [vmem:[%s1418_s26 + $0x18] sm:$0xff] %vm387_vm0, %v518_v30 }
  0xed   : > { %592 = vst.msk [vmem:[%s1418_s26 + $0x58] sm:$0xff] %vm387_vm0, %v558_v31  ;;  %583 = vst.msk [vmem:[%s1418_s26 + $0x10] sm:$0xff] %vm387_vm0, %v513_v34  ;;  %v1186_v36 = vpop.f32.mrb[4].mxu0 }
  0xee   : > { %591 = vst.msk [vmem:[%s1418_s26 + $0x50] sm:$0xff] %vm387_vm0, %v553_v35  ;;  %v1198_v37 = vpop.f32.mrb[4].mxu1  ;;  %v528_v38 = vadd.f32 %v1186_v36, %v1072_v19  ;;  %v522_v40 = vpop.f32.mrb[5].mxu0 }
  0xef   : > { %v568_v39 = vadd.f32 %v1198_v37, %v1072_v19  ;;  %v562_v41 = vpop.f32.mrb[5].mxu1  ;;  %v523_v42 = vadd.f32 %v1072_v19, %v522_v40 }
  0xf0   : > { %v563_v43 = vadd.f32 %v1072_v19, %v562_v41  ;;  %586 = vst.msk [vmem:[%s1418_s26 + $0x28] sm:$0xff] %vm387_vm0, %v528_v38 }
  0xf1   : > { %594 = vst.msk [vmem:[%s1418_s26 + $0x68] sm:$0xff] %vm387_vm0, %v568_v39  ;;  %585 = vst.msk [vmem:[%s1418_s26 + $0x20] sm:$0xff] %vm387_vm0, %v523_v42  ;;  %v1189_v44 = vpop.f32.mrb[6].mxu0 }
  0xf2   : > { %593 = vst.msk [vmem:[%s1418_s26 + $0x60] sm:$0xff] %vm387_vm0, %v563_v43  ;;  %v1201_v45 = vpop.f32.mrb[6].mxu1  ;;  %v538_v46 = vadd.f32 %v1189_v44, %v1072_v19  ;;  %v532_v48 = vpop.f32.mrb[7].mxu0 }
  0xf3   : > { %v578_v47 = vadd.f32 %v1201_v45, %v1072_v19  ;;  %v572_v49 = vpop.f32.mrb[7].mxu1  ;;  %v533_v50 = vadd.f32 %v1072_v19, %v532_v48 }
  0xf4   : > { %v573_v51 = vadd.f32 %v1072_v19, %v572_v49  ;;  %588 = vst.msk [vmem:[%s1418_s26 + $0x38] sm:$0xff] %vm387_vm0, %v538_v46 }
  0xf5   : > { %596 = vst.msk [vmem:[%s1418_s26 + $0x78] sm:$0xff] %vm387_vm0, %v578_v47  ;;  %587 = vst.msk [vmem:[%s1418_s26 + $0x30] sm:$0xff] %vm387_vm0, %v533_v50  ;;  %v1232_v55 = vpop.f32.mrb[8].mxu0 }
  0xf6   : > { %595 = vst.msk [vmem:[%s1418_s26 + $0x70] sm:$0xff] %vm387_vm0, %v573_v51  ;;  %v1206_v54 = vpop.f32.mrb[8].mxu1  ;;  %v846_v57 = vadd.f32 %v1232_v55, %v1452_v53  ;;  %v840_v59 = vpop.f32.mrb[9].mxu0 }
  0xf7   : > { %v677_v56 = vadd.f32 %v1206_v54, %v1447_v52  ;;  %v671_v58 = vpop.f32.mrb[9].mxu1  ;;  %v841_v61 = vadd.f32 %v1452_v53, %v840_v59 }
  0xf8   : > { %v672_v60 = vadd.f32 %v1447_v52, %v671_v58  ;;  %920 = vst.msk [vmem:[%s1472_s16 + $0x8] sm:$0xff] %vm387_vm0, %v846_v57 }
  0xf9   : > { %751 = vst.msk [vmem:[%s1466_s13 + $0x8] sm:$0xff] %vm387_vm0, %v677_v56  ;;  %919 = vst.msk [vmem:[%s1472_s16] sm:$0xff] %vm387_vm0, %v841_v61  ;;  %v1235_v63 = vpop.f32.mrb[10].mxu0 }
  0xfa   : > { %750 = vst.msk [vmem:[%s1466_s13] sm:$0xff] %vm387_vm0, %v672_v60  ;;  %v1209_v62 = vpop.f32.mrb[10].mxu1  ;;  %v856_v1 = vadd.f32 %v1235_v63, %v1452_v53  ;;  %v850_v3 = vpop.f32.mrb[11].mxu0 }
  0xfb   : > { %v687_v0 = vadd.f32 %v1209_v62, %v1447_v52  ;;  %v681_v2 = vpop.f32.mrb[11].mxu1  ;;  %v851_v5 = vadd.f32 %v1452_v53, %v850_v3 }
  0xfc   : > { %v682_v4 = vadd.f32 %v1447_v52, %v681_v2  ;;  %922 = vst.msk [vmem:[%s1472_s16 + $0x18] sm:$0xff] %vm387_vm0, %v856_v1 }
  0xfd   : > { %753 = vst.msk [vmem:[%s1466_s13 + $0x18] sm:$0xff] %vm387_vm0, %v687_v0  ;;  %921 = vst.msk [vmem:[%s1472_s16 + $0x10] sm:$0xff] %vm387_vm0, %v851_v5  ;;  %v1238_v7 = vpop.f32.mrb[12].mxu0 }
  0xfe   : > { %752 = vst.msk [vmem:[%s1466_s13 + $0x10] sm:$0xff] %vm387_vm0, %v682_v4  ;;  %v1212_v6 = vpop.f32.mrb[12].mxu1  ;;  %v866_v9 = vadd.f32 %v1238_v7, %v1452_v53  ;;  %v860_v11 = vpop.f32.mrb[13].mxu0 }
  0xff   : > { %v697_v8 = vadd.f32 %v1212_v6, %v1447_v52  ;;  %v691_v10 = vpop.f32.mrb[13].mxu1  ;;  %v861_v13 = vadd.f32 %v1452_v53, %v860_v11 }
 0x100   : > { %v692_v12 = vadd.f32 %v1447_v52, %v691_v10  ;;  %924 = vst.msk [vmem:[%s1472_s16 + $0x28] sm:$0xff] %vm387_vm0, %v866_v9 }
 0x101   : > { %755 = vst.msk [vmem:[%s1466_s13 + $0x28] sm:$0xff] %vm387_vm0, %v697_v8  ;;  %923 = vst.msk [vmem:[%s1472_s16 + $0x20] sm:$0xff] %vm387_vm0, %v861_v13  ;;  %v1241_v15 = vpop.f32.mrb[14].mxu0 }
 0x102   : > { %754 = vst.msk [vmem:[%s1466_s13 + $0x20] sm:$0xff] %vm387_vm0, %v692_v12  ;;  %v1215_v14 = vpop.f32.mrb[14].mxu1  ;;  %v876_v17 = vadd.f32 %v1241_v15, %v1452_v53  ;;  %v870_v19 = vpop.f32.mrb[15].mxu0 }
 0x103   : > { %v707_v16 = vadd.f32 %v1215_v14, %v1447_v52  ;;  %v701_v18 = vpop.f32.mrb[15].mxu1  ;;  %v871_v21 = vadd.f32 %v1452_v53, %v870_v19 }
 0x104   : > { %v702_v20 = vadd.f32 %v1447_v52, %v701_v18  ;;  %926 = vst.msk [vmem:[%s1472_s16 + $0x38] sm:$0xff] %vm387_vm0, %v876_v17 }
 0x105   : > { %757 = vst.msk [vmem:[%s1466_s13 + $0x38] sm:$0xff] %vm387_vm0, %v707_v16  ;;  %925 = vst.msk [vmem:[%s1472_s16 + $0x30] sm:$0xff] %vm387_vm0, %v871_v21  ;;  %v1244_v23 = vpop.f32.mrb[16].mxu0 }
 0x106   : > { %756 = vst.msk [vmem:[%s1466_s13 + $0x30] sm:$0xff] %vm387_vm0, %v702_v20  ;;  %v1218_v22 = vpop.f32.mrb[16].mxu1  ;;  %v886_v25 = vadd.f32 %v1244_v23, %v1452_v53  ;;  %v880_v27 = vpop.f32.mrb[17].mxu0 }
 0x107   : > { %v717_v24 = vadd.f32 %v1218_v22, %v1447_v52  ;;  %v711_v26 = vpop.f32.mrb[17].mxu1  ;;  %v881_v29 = vadd.f32 %v1452_v53, %v880_v27 }
 0x108   : > { %v712_v28 = vadd.f32 %v1447_v52, %v711_v26  ;;  %928 = vst.msk [vmem:[%s1472_s16 + $0x48] sm:$0xff] %vm387_vm0, %v886_v25 }
 0x109   : > { %759 = vst.msk [vmem:[%s1466_s13 + $0x48] sm:$0xff] %vm387_vm0, %v717_v24  ;;  %927 = vst.msk [vmem:[%s1472_s16 + $0x40] sm:$0xff] %vm387_vm0, %v881_v29  ;;  %v1247_v31 = vpop.f32.mrb[18].mxu0 }
 0x10a   : > { %758 = vst.msk [vmem:[%s1466_s13 + $0x40] sm:$0xff] %vm387_vm0, %v712_v28  ;;  %v1221_v30 = vpop.f32.mrb[18].mxu1  ;;  %v896_v33 = vadd.f32 %v1247_v31, %v1452_v53  ;;  %v890_v35 = vpop.f32.mrb[19].mxu0 }
 0x10b   : > { %v727_v32 = vadd.f32 %v1221_v30, %v1447_v52  ;;  %v721_v34 = vpop.f32.mrb[19].mxu1  ;;  %v891_v37 = vadd.f32 %v1452_v53, %v890_v35 }
 0x10c   : > { %v722_v36 = vadd.f32 %v1447_v52, %v721_v34  ;;  %930 = vst.msk [vmem:[%s1472_s16 + $0x58] sm:$0xff] %vm387_vm0, %v896_v33 }
 0x10d   : > { %761 = vst.msk [vmem:[%s1466_s13 + $0x58] sm:$0xff] %vm387_vm0, %v727_v32  ;;  %929 = vst.msk [vmem:[%s1472_s16 + $0x50] sm:$0xff] %vm387_vm0, %v891_v37  ;;  %v1250_v39 = vpop.f32.mrb[20].mxu0 }
 0x10e   : > { %760 = vst.msk [vmem:[%s1466_s13 + $0x50] sm:$0xff] %vm387_vm0, %v722_v36  ;;  %v1224_v38 = vpop.f32.mrb[20].mxu1  ;;  %v906_v41 = vadd.f32 %v1250_v39, %v1452_v53  ;;  %v900_v43 = vpop.f32.mrb[21].mxu0 }
 0x10f   : > { %v737_v40 = vadd.f32 %v1224_v38, %v1447_v52  ;;  %v731_v42 = vpop.f32.mrb[21].mxu1  ;;  %v901_v45 = vadd.f32 %v1452_v53, %v900_v43 }
 0x110   : > { %v732_v44 = vadd.f32 %v1447_v52, %v731_v42  ;;  %932 = vst.msk [vmem:[%s1472_s16 + $0x68] sm:$0xff] %vm387_vm0, %v906_v41 }
 0x111   : > { %763 = vst.msk [vmem:[%s1466_s13 + $0x68] sm:$0xff] %vm387_vm0, %v737_v40  ;;  %931 = vst.msk [vmem:[%s1472_s16 + $0x60] sm:$0xff] %vm387_vm0, %v901_v45  ;;  %v1253_v47 = vpop.f32.mrb[22].mxu0 }
 0x112   : > { %762 = vst.msk [vmem:[%s1466_s13 + $0x60] sm:$0xff] %vm387_vm0, %v732_v44  ;;  %v1227_v46 = vpop.f32.mrb[22].mxu1  ;;  %v916_v49 = vadd.f32 %v1253_v47, %v1452_v53  ;;  %v910_v51 = vpop.f32.mrb[23].mxu0 }
 0x113   : > { %v747_v48 = vadd.f32 %v1227_v46, %v1447_v52  ;;  %v741_v50 = vpop.f32.mrb[23].mxu1  ;;  %v911_v55 = vadd.f32 %v1452_v53, %v910_v51 }
 0x114   : > { %v742_v54 = vadd.f32 %v1447_v52, %v741_v50  ;;  %934 = vst.msk [vmem:[%s1472_s16 + $0x78] sm:$0xff] %vm387_vm0, %v916_v49 }
 0x115   : > { %765 = vst.msk [vmem:[%s1466_s13 + $0x78] sm:$0xff] %vm387_vm0, %v747_v48  ;;  %933 = vst.msk [vmem:[%s1472_s16 + $0x70] sm:$0xff] %vm387_vm0, %v911_v55 }
 0x116   : > { %764 = vst.msk [vmem:[%s1466_s13 + $0x70] sm:$0xff] %vm387_vm0, %v742_v54 }
 0x117 PF: > { %s20_s30 = sadd.s32 1, %s1270_s30  }
 0x118   : > { %p17_p4 = scmp.ge.s32.totalorder %s20_s30, 6  }
 0x11a   :  { %19 = sbr.rel (!%p17_p4) target bundleno = 1 (0x1), region = 102 }

</bundles_post_ra>
